<compile_context>
chip_gen: v6e
topology: v6e:2x2x1
jax: 0.10.0
libtpu: 0.0.40
codegen_flags: <defaults>
</compile_context>

<pallas_src>
import functools

import jax
import jax.numpy as jnp
from jax.experimental import pallas as pl
from jax.experimental.pallas import tpu as pltpu

_LANE = 128


def _round_up(n, m):
    return ((n + m - 1) // m) * m


def _pad_to(a, shape):
    pads = [(0, t - s) for s, t in zip(a.shape, shape)]
    if all(p == (0, 0) for p in pads):
        return a
    return jnp.pad(a, pads)


def _head_kernel(*refs, if_prob: bool, has_extra: bool, out_valid: int):
    if has_extra:
        (x_ref, ex_ref, w1x_ref, w1e_ref, b1_ref,
         w2_ref, b2_ref, w3_ref, b3_ref, o_ref) = refs
    else:
        (x_ref, w1x_ref, b1_ref,
         w2_ref, b2_ref, w3_ref, b3_ref, o_ref) = refs

    # --- layer 1: split matmul (replaces torch.cat((x, extra_x), dim=1)),
    #     f32 MXU accumulation, f32 bias + ReLU on the VPU.
    h = jnp.dot(x_ref[...], w1x_ref[...], preferred_element_type=jnp.float32)
    if has_extra:
        h = h + jnp.dot(ex_ref[...], w1e_ref[...],
                        preferred_element_type=jnp.float32)
    h = jnp.maximum(h + b1_ref[...], 0.0)

    # --- layer 2
    h = jnp.dot(h.astype(w2_ref.dtype), w2_ref[...],
                preferred_element_type=jnp.float32) + b2_ref[...]
    h = jnp.maximum(h, 0.0)

    # --- layer 3 (logits)
    out = jnp.dot(h.astype(w3_ref.dtype), w3_ref[...],
                  preferred_element_type=jnp.float32) + b3_ref[...]

    if if_prob:
        if out_valid < out.shape[-1]:
            # zero-padded output columns must not participate in the softmax
            col = jax.lax.broadcasted_iota(jnp.int32, out.shape, dimension=1)
            out = jnp.where(col < out_valid, out, -jnp.inf)
        out = out - jnp.max(out, axis=-1, keepdims=True)   # XLU reduce
        e = jnp.exp(out)                                    # EUP
        denom = jnp.sum(e, axis=-1, keepdims=True)          # XLU reduce
        out = e * pl.reciprocal(denom, approx=True)         # EUP vrcp

    o_ref[...] = out.astype(o_ref.dtype)


def head_forward(x, params, *, if_prob=False, extra_x=None,
                 compute_dtype=jnp.bfloat16, batch_tile=None):
    """Pallas implementation of Head.forward.

    x:        (B, Dx) float32
    extra_x:  optional (B, De) float32 (PyTorch concatenates along dim=1;
              here the first matmul is split inside the kernel instead)
    params:   w1 (Dx+De, H), b1 (1, H), w2 (H, H), b2 (1, H),
              w3 (H, O), b3 (1, O)   -- weights stored (in, out), i.e.
              transposed relative to nn.Linear's (out, in).
    """
    w1, b1 = params["w1"], params["b1"]
    w2, b2 = params["w2"], params["b2"]
    w3, b3 = params["w3"], params["b3"]

    B, D_x = x.shape
    H = w1.shape[1]
    O = w3.shape[1]
    has_extra = extra_x is not None
    D_e = extra_x.shape[1] if has_extra else 0
    assert w1.shape[0] == D_x + D_e, "w1 rows must equal Dx + De"
    assert w2.shape == (H, H) and w3.shape[0] == H

    # pad hidden/output feature dims to a full 128-lane width
    Hp = _round_up(H, _LANE)
    Op = _round_up(O, _LANE)

    # sublane quantum: 8 rows for f32 operands, 16 for bf16 (packed sublanes)
    sub = 8 if jnp.dtype(compute_dtype).itemsize == 4 else 16

    # weights in compute_dtype (bf16 MXU fast path); biases kept f32
    w1p = _pad_to(w1, (D_x + D_e, Hp)).astype(compute_dtype)
    w1x = w1p[:D_x]
    b1p = _pad_to(b1, (1, Hp)).astype(jnp.float32)
    w2p = _pad_to(w2, (Hp, Hp)).astype(compute_dtype)
    b2p = _pad_to(b2, (1, Hp)).astype(jnp.float32)
    w3p = _pad_to(w3, (Hp, Op)).astype(compute_dtype)
    b3p = _pad_to(b3, (1, Op)).astype(jnp.float32)

    # Batch tile: largest sublane-multiple up to 256 rows (per-step overhead
    # amortized; activation tiles stay tiny next to the resident weights).
    if batch_tile is None:
        TB = min(_round_up(B, sub), 256)
    else:
        TB = _round_up(batch_tile, sub)
    Bp = _round_up(B, TB)

    xc = _pad_to(x, (Bp, D_x)).astype(compute_dtype)
    operands = [xc]
    in_specs = [pl.BlockSpec((TB, D_x), lambda i: (i, 0))]
    if has_extra:
        ec = _pad_to(extra_x, (Bp, D_e)).astype(compute_dtype)
        w1e = w1p[D_x:]
        operands += [ec, w1x, w1e]
        in_specs += [
            pl.BlockSpec((TB, D_e), lambda i: (i, 0)),
            pl.BlockSpec((D_x, Hp), lambda i: (0, 0)),   # resident weight
            pl.BlockSpec((D_e, Hp), lambda i: (0, 0)),   # resident weight
        ]
    else:
        operands += [w1x]
        in_specs += [pl.BlockSpec((D_x, Hp), lambda i: (0, 0))]
    operands += [b1p, w2p, b2p, w3p, b3p]
    in_specs += [
        pl.BlockSpec((1, Hp), lambda i: (0, 0)),
        pl.BlockSpec((Hp, Hp), lambda i: (0, 0)),
        pl.BlockSpec((1, Hp), lambda i: (0, 0)),
        pl.BlockSpec((Hp, Op), lambda i: (0, 0)),
        pl.BlockSpec((1, Op), lambda i: (0, 0)),
    ]

    flops = 2 * Bp * ((D_x + D_e) * Hp + Hp * Hp + Hp * Op)
    transcendentals = Bp * Op if if_prob else 0
    bytes_accessed = (sum(int(a.size) * a.dtype.itemsize for a in operands)
                      + Bp * Op * 4)

    kernel = functools.partial(_head_kernel, if_prob=if_prob,
                               has_extra=has_extra, out_valid=O)

    out = pl.pallas_call(
        kernel,
        out_shape=jax.ShapeDtypeStruct((Bp, Op), jnp.float32),
        grid=(Bp // TB,),
        in_specs=in_specs,
        out_specs=pl.BlockSpec((TB, Op), lambda i: (i, 0)),
        compiler_params=pltpu.CompilerParams(
            dimension_semantics=("parallel",)),
        cost_estimate=pl.CostEstimate(flops=flops,
                                      transcendentals=transcendentals,
                                      bytes_accessed=bytes_accessed),
    )(*operands)

    # strip batch padding and lane padding
    return out[:B, :O]


def init_head_params(key, input_dim, output_dim, hid_dim=None):
    """Deterministic init mimicking nn.Linear default (uniform +/- 1/sqrt(fan_in))."""
    hid_dim = hid_dim if hid_dim else input_dim
    ks = jax.random.split(key, 6)

    def linear(kw, kb, fan_in, fan_out):
        bound = 1.0 / jnp.sqrt(fan_in)
        w = jax.random.uniform(kw, (fan_in, fan_out), jnp.float32, -bound, bound)
        b = jax.random.uniform(kb, (1, fan_out), jnp.float32, -bound, bound)
        return w, b

    w1, b1 = linear(ks[0], ks[1], input_dim, hid_dim)
    w2, b2 = linear(ks[2], ks[3], hid_dim, hid_dim)
    w3, b3 = linear(ks[4], ks[5], hid_dim, output_dim)
    return dict(w1=w1, b1=b1, w2=w2, b2=b2, w3=w3, b3=b3)


def _reference(x, params, *, if_prob=False, extra_x=None):
    if extra_x is not None:
        x = jnp.concatenate([x, extra_x], axis=1)
    h = jnp.maximum(x @ params["w1"] + params["b1"], 0.0)
    h = jnp.maximum(h @ params["w2"] + params["b2"], 0.0)
    out = h @ params["w3"] + params["b3"]
    if if_prob:
        out = jax.nn.softmax(out, axis=1)
    return out


if __name__ == "__main__":
    key = jax.random.PRNGKey(0)
    k_x, k_ex, k_p = jax.random.split(key, 3)

    batch = 8
    base_dim = 16          # x feature dim
    extra_dim = 16         # extra_x feature dim
    input_dim = base_dim + extra_dim   # after (logical) concat along dim=1
    hid_dim = 32
    output_dim = 16

    x = jax.random.normal(k_x, (batch, base_dim), jnp.float32)
    extra_x = jax.random.normal(k_ex, (batch, extra_dim), jnp.float32)
    params = init_head_params(k_p, input_dim, output_dim, hid_dim)

    ref_probs = _reference(x, params, if_prob=True, extra_x=extra_x)

    # f32 compute path (tight check; only approx-vrcp error in the softmax)
    out_f32 = head_forward(x, params, if_prob=True, extra_x=extra_x,
                           compute_dtype=jnp.float32)
    out_f32 = jax.block_until_ready(out_f32)
    assert out_f32.shape == (batch, output_dim)
    assert jnp.allclose(out_f32, ref_probs, atol=1e-3, rtol=1e-3)

    # bf16 fast path (bf16 MXU operands, f32 accumulation) -> relaxed tolerance
    out_bf16 = head_forward(x, params, if_prob=True, extra_x=extra_x,
                            compute_dtype=jnp.bfloat16)
    out_bf16 = jax.block_until_ready(out_bf16)
    assert out_bf16.shape == (batch, output_dim)
    assert jnp.allclose(out_bf16, ref_probs, atol=3e-2, rtol=3e-2)

    # no extra_x, no softmax (raw logits), f32 path
    params2 = init_head_params(k_p, base_dim, output_dim, hid_dim)
    out_logits = head_forward(x, params2, if_prob=False,
                              compute_dtype=jnp.float32)
    out_logits = jax.block_until_ready(out_logits)
    ref_logits = _reference(x, params2, if_prob=False)
    assert jnp.allclose(out_logits, ref_logits, atol=1e-4, rtol=1e-4)

    print("KERNEL_OK")
</pallas_src>

<mosaic_0001>
module attributes {stable_mosaic.version = 11 : i64} {
  func.func @_head_kernel(%arg0: i32, %arg1: memref<8x16xf32, #tpu.memory_space<vmem>>, %arg2: memref<8x16xf32, #tpu.memory_space<vmem>>, %arg3: memref<16x128xf32, #tpu.memory_space<vmem>>, %arg4: memref<16x128xf32, #tpu.memory_space<vmem>>, %arg5: memref<1x128xf32, #tpu.memory_space<vmem>>, %arg6: memref<128x128xf32, #tpu.memory_space<vmem>>, %arg7: memref<1x128xf32, #tpu.memory_space<vmem>>, %arg8: memref<128x128xf32, #tpu.memory_space<vmem>>, %arg9: memref<1x128xf32, #tpu.memory_space<vmem>>, %arg10: memref<8x128xf32, #tpu.memory_space<vmem>>) attributes {dimension_semantics = [#tpu.dimension_semantics<parallel>], iteration_bounds = array<i64: 1>, scalar_prefetch = 0 : i64, scratch_operands = 0 : i64, tpu.core_type = #tpu.core_type<tc>, window_params = [{transform_indices = @transform_0, window_bounds = array<i64: 8, 16>}, {transform_indices = @transform_1, window_bounds = array<i64: 8, 16>}, {pipeline_mode = #tpu.pipeline_mode<synchronous>, transform_indices = @transform_2, window_bounds = array<i64: 16, 128>}, {pipeline_mode = #tpu.pipeline_mode<synchronous>, transform_indices = @transform_3, window_bounds = array<i64: 16, 128>}, {pipeline_mode = #tpu.pipeline_mode<synchronous>, transform_indices = @transform_4, window_bounds = array<i64: 1, 128>}, {pipeline_mode = #tpu.pipeline_mode<synchronous>, transform_indices = @transform_5, window_bounds = array<i64: 128, 128>}, {pipeline_mode = #tpu.pipeline_mode<synchronous>, transform_indices = @transform_6, window_bounds = array<i64: 1, 128>}, {pipeline_mode = #tpu.pipeline_mode<synchronous>, transform_indices = @transform_7, window_bounds = array<i64: 128, 128>}, {pipeline_mode = #tpu.pipeline_mode<synchronous>, transform_indices = @transform_8, window_bounds = array<i64: 1, 128>}, {transform_indices = @transform_9, window_bounds = array<i64: 8, 128>}]} {
    %c0 = arith.constant 0 : index
    %c0_0 = arith.constant 0 : index
    %0 = vector.load %arg1[%c0, %c0_0] : memref<8x16xf32, #tpu.memory_space<vmem>>, vector<8x16xf32>
    %c0_1 = arith.constant 0 : index
    %c0_2 = arith.constant 0 : index
    %1 = vector.load %arg3[%c0_1, %c0_2] : memref<16x128xf32, #tpu.memory_space<vmem>>, vector<16x128xf32>
    %cst = arith.constant dense<0.000000e+00> : vector<8x128xf32>
    %2 = tpu.matmul %0, %1, %cst {dimension_numbers = #tpu.dot_dimension_numbers<[1], [0], [0], [1], [0, 0, 1, 1], [], []>} : vector<8x16xf32>, vector<16x128xf32>, vector<8x128xf32> -> vector<8x128xf32>
    %c0_3 = arith.constant 0 : index
    %c0_4 = arith.constant 0 : index
    %3 = vector.load %arg2[%c0_3, %c0_4] : memref<8x16xf32, #tpu.memory_space<vmem>>, vector<8x16xf32>
    %c0_5 = arith.constant 0 : index
    %c0_6 = arith.constant 0 : index
    %4 = vector.load %arg4[%c0_5, %c0_6] : memref<16x128xf32, #tpu.memory_space<vmem>>, vector<16x128xf32>
    %cst_7 = arith.constant dense<0.000000e+00> : vector<8x128xf32>
    %5 = tpu.matmul %3, %4, %cst_7 {dimension_numbers = #tpu.dot_dimension_numbers<[1], [0], [0], [1], [0, 0, 1, 1], [], []>} : vector<8x16xf32>, vector<16x128xf32>, vector<8x128xf32> -> vector<8x128xf32>
    %6 = arith.addf %2, %5 : vector<8x128xf32>
    %c0_8 = arith.constant 0 : index
    %c0_9 = arith.constant 0 : index
    %7 = vector.load %arg5[%c0_8, %c0_9] : memref<1x128xf32, #tpu.memory_space<vmem>>, vector<1x128xf32>
    %8 = vector.broadcast %7 : vector<1x128xf32> to vector<8x128xf32>
    %9 = arith.addf %6, %8 : vector<8x128xf32>
    %cst_10 = arith.constant 0.000000e+00 : f32
    %10 = vector.broadcast %cst_10 : f32 to vector<8x128xf32>
    %11 = arith.maximumf %9, %10 : vector<8x128xf32>
    %c0_11 = arith.constant 0 : index
    %c0_12 = arith.constant 0 : index
    %12 = vector.load %arg6[%c0_11, %c0_12] : memref<128x128xf32, #tpu.memory_space<vmem>>, vector<128x128xf32>
    %cst_13 = arith.constant dense<0.000000e+00> : vector<8x128xf32>
    %13 = tpu.matmul %11, %12, %cst_13 {dimension_numbers = #tpu.dot_dimension_numbers<[1], [0], [0], [1], [0, 0, 1, 1], [], []>} : vector<8x128xf32>, vector<128x128xf32>, vector<8x128xf32> -> vector<8x128xf32>
    %c0_14 = arith.constant 0 : index
    %c0_15 = arith.constant 0 : index
    %14 = vector.load %arg7[%c0_14, %c0_15] : memref<1x128xf32, #tpu.memory_space<vmem>>, vector<1x128xf32>
    %15 = vector.broadcast %14 : vector<1x128xf32> to vector<8x128xf32>
    %16 = arith.addf %13, %15 : vector<8x128xf32>
    %cst_16 = arith.constant 0.000000e+00 : f32
    %17 = vector.broadcast %cst_16 : f32 to vector<8x128xf32>
    %18 = arith.maximumf %16, %17 : vector<8x128xf32>
    %c0_17 = arith.constant 0 : index
    %c0_18 = arith.constant 0 : index
    %19 = vector.load %arg8[%c0_17, %c0_18] : memref<128x128xf32, #tpu.memory_space<vmem>>, vector<128x128xf32>
    %cst_19 = arith.constant dense<0.000000e+00> : vector<8x128xf32>
    %20 = tpu.matmul %18, %19, %cst_19 {dimension_numbers = #tpu.dot_dimension_numbers<[1], [0], [0], [1], [0, 0, 1, 1], [], []>} : vector<8x128xf32>, vector<128x128xf32>, vector<8x128xf32> -> vector<8x128xf32>
    %c0_20 = arith.constant 0 : index
    %c0_21 = arith.constant 0 : index
    %21 = vector.load %arg9[%c0_20, %c0_21] : memref<1x128xf32, #tpu.memory_space<vmem>>, vector<1x128xf32>
    %22 = vector.broadcast %21 : vector<1x128xf32> to vector<8x128xf32>
    %23 = arith.addf %20, %22 : vector<8x128xf32>
    %24 = tpu.iota {dimensions = array<i32: 1>} : vector<8x128xi32>
    %c16_i32 = arith.constant 16 : i32
    %25 = vector.broadcast %c16_i32 : i32 to vector<8x128xi32>
    %26 = arith.cmpi slt, %24, %25 : vector<8x128xi32>
    %cst_22 = arith.constant 0xFF800000 : f32
    %27 = vector.broadcast %cst_22 : f32 to vector<8x128xf32>
    %28 = arith.select %26, %23, %27 : vector<8x128xi1>, vector<8x128xf32>
    %cst_23 = arith.constant dense<0xFF800000> : vector<8xf32>
    %29 = vector.multi_reduction <maximumf>, %28, %cst_23 [1] : vector<8x128xf32> to vector<8xf32>
    %30 = vector.shape_cast %29 : vector<8xf32> to vector<8x1xf32>
    %31 = vector.broadcast %30 : vector<8x1xf32> to vector<8x128xf32>
    %32 = arith.subf %28, %31 : vector<8x128xf32>
    %33 = math.exp %32 : vector<8x128xf32>
    %cst_24 = arith.constant dense<0.000000e+00> : vector<8xf32>
    %34 = vector.multi_reduction <add>, %33, %cst_24 [1] : vector<8x128xf32> to vector<8xf32>
    %35 = vector.shape_cast %34 : vector<8xf32> to vector<8x1xf32>
    %36 = tpu.reciprocal %35 {approx = true} : vector<8x1xf32> -> vector<8x1xf32>
    %37 = vector.broadcast %36 : vector<8x1xf32> to vector<8x128xf32>
    %38 = arith.mulf %33, %37 : vector<8x128xf32>
    %c0_25 = arith.constant 0 : index
    %c0_26 = arith.constant 0 : index
    %39 = vector.load %arg10[%c0_25, %c0_26] : memref<8x128xf32, #tpu.memory_space<vmem>>, vector<8x128xf32>
    tpu.vector_store %arg10[%c0_25, %c0_26], %38 {strides = array<i32>} : memref<8x128xf32, #tpu.memory_space<vmem>>, vector<8x128xf32>,
    return
  }
  func.func @transform_0(%arg0: i32) -> (i32, i32) {
    %c0_i32 = arith.constant 0 : i32
    %c0_i32_0 = arith.constant 0 : i32
    return %arg0, %c0_i32 : i32, i32
  }
  func.func @transform_1(%arg0: i32) -> (i32, i32) {
    %c0_i32 = arith.constant 0 : i32
    %c0_i32_0 = arith.constant 0 : i32
    return %arg0, %c0_i32 : i32, i32
  }
  func.func @transform_2(%arg0: i32) -> (i32, i32) {
    %c0_i32 = arith.constant 0 : i32
    %c0_i32_0 = arith.constant 0 : i32
    %c0_i32_1 = arith.constant 0 : i32
    return %c0_i32, %c0_i32_0 : i32, i32
  }
  func.func @transform_3(%arg0: i32) -> (i32, i32) {
    %c0_i32 = arith.constant 0 : i32
    %c0_i32_0 = arith.constant 0 : i32
    %c0_i32_1 = arith.constant 0 : i32
    return %c0_i32, %c0_i32_0 : i32, i32
  }
  func.func @transform_4(%arg0: i32) -> (i32, i32) {
    %c0_i32 = arith.constant 0 : i32
    %c0_i32_0 = arith.constant 0 : i32
    %c0_i32_1 = arith.constant 0 : i32
    return %c0_i32, %c0_i32_0 : i32, i32
  }
  func.func @transform_5(%arg0: i32) -> (i32, i32) {
    %c0_i32 = arith.constant 0 : i32
    %c0_i32_0 = arith.constant 0 : i32
    %c0_i32_1 = arith.constant 0 : i32
    return %c0_i32, %c0_i32_0 : i32, i32
  }
  func.func @transform_6(%arg0: i32) -> (i32, i32) {
    %c0_i32 = arith.constant 0 : i32
    %c0_i32_0 = arith.constant 0 : i32
    %c0_i32_1 = arith.constant 0 : i32
    return %c0_i32, %c0_i32_0 : i32, i32
  }
  func.func @transform_7(%arg0: i32) -> (i32, i32) {
    %c0_i32 = arith.constant 0 : i32
    %c0_i32_0 = arith.constant 0 : i32
    %c0_i32_1 = arith.constant 0 : i32
    return %c0_i32, %c0_i32_0 : i32, i32
  }
  func.func @transform_8(%arg0: i32) -> (i32, i32) {
    %c0_i32 = arith.constant 0 : i32
    %c0_i32_0 = arith.constant 0 : i32
    %c0_i32_1 = arith.constant 0 : i32
    return %c0_i32, %c0_i32_0 : i32, i32
  }
  func.func @transform_9(%arg0: i32) -> (i32, i32) {
    %c0_i32 = arith.constant 0 : i32
    %c0_i32_0 = arith.constant 0 : i32
    return %arg0, %c0_i32 : i32, i32
  }
}

</mosaic_0001>

<bundles_post_ra>
// kernel: tpu_custom_call.1
= control target key start
LH: loop header
LB: loop body
LE: loop exit
PB: predicated region body
PF: predicated region fallthrough
CT: control target
= control target key end

     0   :  { %14 = vsyncpa [#allocation3], 0  ;;  %s933_s0 = inlined_call_operand.hbm [shape: f32[8,16], index: 0, kind: input, shape index: {}]   ;;  %s934_s1 = inlined_call_operand.hbm [shape: f32[8,16], index: 1, kind: input, shape index: {}]   ;;  %s935_s2 = inlined_call_operand.hbm [shape: f32[16,128], index: 2, kind: input, shape index: {}]   ;;  %s936_s3 = inlined_call_operand.hbm [shape: f32[16,128], index: 3, kind: input, shape index: {}]   ;;  %s937_s4 = inlined_call_operand.vmem [shape: f32[1,128], index: 4, kind: input, shape index: {}]   ;;  %s938_s5 = inlined_call_operand.hbm [shape: f32[128,128], index: 5, kind: input, shape index: {}]   ;;  %s939_s6 = inlined_call_operand.vmem [shape: f32[1,128], index: 6, kind: input, shape index: {}]   ;;  %s940_s7 = inlined_call_operand.hbm [shape: f32[128,128], index: 7, kind: input, shape index: {}]   ;;  %s941_s8 = inlined_call_operand.vmem [shape: f32[1,128], index: 8, kind: input, shape index: {}]   ;;  %s942_s9 = inlined_call_operand.hbm [shape: f32[8,128], index: 9, kind: output, shape index: {}]  }
   0x1   :  { %15 = vsyncpa [#allocation6], 0 }
   0x2   :  { %16 = vsyncpa [#allocation9], 0 }
   0x3   :  { %17 = vsyncpa [#allocation12], 0 }
   0x4   :  { %18 = vsyncpa [#allocation4], 0  ;;  %s786_s30 = smov [#allocation5]  }
   0x5   :  { %s35_s10 = sshll.u32 %s786_s30, 4  ;;  %s36_s10 = int_to_ptr.vmem [resolvable:$true] %s35_s10 }
   0x6   :  { %s644_s11 = scalar_lea.vmem %s36_s10, 128  ;;  %p649_p1 = scmp.lt.s32.totalorder %s36_s10, %s36_s10 }
   0x7   :  { %p645_p0 = scmp.ne.s32.totalorder %s36_s10, %s644_s11  ;;  %p650_p2 = scmp.lt.s32.totalorder %s644_s11, %s644_s11 }
   0x9   :  { %p651_p3 = por %p650_p2, %p649_p1 }
   0xb   :  { %p652_p4 = pnand %p651_p3, %p645_p0 }
   0xd   :  { %655 = shalt.err (!%p652_p4)
}
   0xe   :  { %38 = dma.hbm_to_vmem [thread:$0]  %s934_s1, 128, %s36_s10, [#allocation6]  }
   0xf   :  { %s787_s14 = smov [#allocation8]   ;;  %s788_s16 = smov [#allocation2]  }
  0x10   :  { %s56_s15 = sshll.u32 %s787_s14, 4  ;;  %s25_s17 = sshll.u32 %s788_s16, 4  ;;  %s57_s15 = int_to_ptr.vmem [resolvable:$true] %s56_s15  ;;  %s26_s17 = int_to_ptr.vmem [resolvable:$true] %s25_s17 }
  0x11   :  { %s664_s18 = scalar_lea.vmem %s57_s15, 256  ;;  %p669_p6 = scmp.lt.s32.totalorder %s57_s15, %s57_s15 }
  0x12   :  { %p665_p5 = scmp.ne.s32.totalorder %s57_s15, %s664_s18  ;;  %p670_p7 = scmp.lt.s32.totalorder %s664_s18, %s664_s18 }
  0x14   :  { %p671_p8 = por %p670_p7, %p669_p6 }
  0x16   :  { %p672_p9 = pnand %p671_p8, %p665_p5 }
  0x18   :  { %675 = shalt.err (!%p672_p9)
}
  0x19   :  { %s789_s19 = smov 128   ;;  %s790_s20 = smov 8  }
  0x1a   :  { %62 = dma.hbm_to_vmem [thread:$0]  %s936_s3, 256, %s57_s15, [#allocation9], %s789_s19, %s789_s19, %s790_s20  }
  0x1b   :  { %s684_s1 = scalar_lea.vmem %s26_s17, 128  ;;  %p689_p11 = scmp.lt.s32.totalorder %s26_s17, %s26_s17 }
  0x1c   :  { %p685_p10 = scmp.ne.s32.totalorder %s26_s17, %s684_s1  ;;  %p690_p12 = scmp.lt.s32.totalorder %s684_s1, %s684_s1 }
  0x1e   :  { %p691_p13 = por %p690_p12, %p689_p11 }
  0x20   :  { %p692_p0 = pnand %p691_p13, %p685_p10 }
  0x22   :  { %695 = shalt.err (!%p692_p0)
}
  0x23   :  { %28 = dma.hbm_to_vmem [thread:$0]  %s933_s0, 128, %s26_s17, [#allocation3]  }
  0x24   :  { %s791_s25 = smov [#allocation7]   ;;  %s792_s27 = smov [#allocation10]  }
  0x25   :  { %s44_s26 = sshll.u32 %s791_s25, 4  ;;  %s70_s28 = sshll.u32 %s792_s27, 4  ;;  %s45_s26 = int_to_ptr.vmem [resolvable:$true] %s44_s26  ;;  %s71_s28 = int_to_ptr.vmem [resolvable:$true] %s70_s28 }
  0x26   :  { %s704_s29 = scalar_lea.vmem %s45_s26, 256  ;;  %p709_p2 = scmp.lt.s32.totalorder %s45_s26, %s45_s26 }
  0x27   :  { %p705_p1 = scmp.ne.s32.totalorder %s45_s26, %s704_s29  ;;  %p710_p3 = scmp.lt.s32.totalorder %s704_s29, %s704_s29 }
  0x29   :  { %p711_p4 = por %p710_p3, %p709_p2 }
  0x2b   :  { %p712_p5 = pnand %p711_p4, %p705_p1 }
  0x2d   :  { %715 = shalt.err (!%p712_p5)
}
  0x2e   :  { %50 = dma.hbm_to_vmem [thread:$0]  %s935_s2, 256, %s45_s26, [#allocation6], %s789_s19, %s789_s19, %s790_s20  }
  0x2f   :  { %s724_s0 = scalar_lea.vmem %s71_s28, 2048  ;;  %p729_p7 = scmp.lt.s32.totalorder %s71_s28, %s71_s28 }
  0x30   :  { %p725_p6 = scmp.ne.s32.totalorder %s71_s28, %s724_s0  ;;  %p730_p8 = scmp.lt.s32.totalorder %s724_s0, %s724_s0 }
  0x32   :  { %p731_p9 = por %p730_p8, %p729_p7 }
  0x34   :  { %p732_p10 = pnand %p731_p9, %p725_p6 }
  0x36   :  { %735 = shalt.err (!%p732_p10)
}
  0x37   :  { %76 = dma.hbm_to_vmem [thread:$0]  %s938_s5, 2048, %s71_s28, [#allocation9], %s789_s19, %s789_s19, %s790_s20  }
  0x38   :  { %s793_s12 = smov [#allocation11]  }
  0x39   :  { %s84_s13 = sshll.u32 %s793_s12, 4  ;;  %s85_s13 = int_to_ptr.vmem [resolvable:$true] %s84_s13 }
  0x3a   :  { %s744_s14 = scalar_lea.vmem %s85_s13, 2048  ;;  %p749_p12 = scmp.lt.s32.totalorder %s85_s13, %s85_s13 }
  0x3b   :  { %p745_p11 = scmp.ne.s32.totalorder %s85_s13, %s744_s14  ;;  %p750_p13 = scmp.lt.s32.totalorder %s744_s14, %s744_s14 }
  0x3d   :  { %p751_p0 = por %p750_p13, %p749_p12 }
  0x3f   :  { %p752_p1 = pnand %p751_p0, %p745_p11 }
  0x41   :  { %755 = shalt.err (!%p752_p1)
}
  0x42   :  { %90 = dma.hbm_to_vmem [thread:$0]  %s940_s7, 2048, %s85_s13, [#allocation12], %s789_s19, %s789_s19, %s790_s20  }
  0x43   :  { %776 = dma.done.wait [#allocation3], 128  }
  0x44   :  { %777 = vsyncadd [#allocation3], 4294967168 }
  0x45   :  { %778 = dma.done.wait [#allocation6], 384  }
  0x46   :  { %779 = vsyncadd [#allocation6], 4294966912 }
  0x47   :  { %780 = dma.done.wait [#allocation9], 2304  }
  0x48   :  { %781 = vsyncadd [#allocation9], 4294964992 }
  0x49   :  { %782 = dma.done.wait [#allocation12], 2048  }
  0x4a   :  { %783 = vsyncadd [#allocation12], 4294965248  ;;  %v794_v0 = vmov 0.0   ;;  %vm795_vm0 = vmmov 0   ;;  %v116_v1 = vld [vmem:[#allocation8 + $0x8] sm:$0xff]  ;;  %v113_v2 = vld [vmem:[#allocation7 + $0x8] sm:$0xff]  ;;  %v460_v52 = vlaneseq }
  0x4b   :  { %537 = vmatprep.subr.mxu0 %v794_v0  ;;  %544 = vmatprep.subr.mxu1 %v794_v0  ;;  %v115_v3 = vld [vmem:[#allocation8] sm:$0xff]  ;;  %v112_v4 = vld [vmem:[#allocation7] sm:$0xff]  ;;  %v114_v5 = vld [vmem:[#allocation5] sm:$0xff]  ;;  %vm117_vm1 = vcmask 130048  }
  0x4c   :  { %541 = vmatprep.mubr.msk.f32.mxu0 %vm795_vm0, %v794_v0  ;;  %548 = vmatprep.mubr.msk.f32.mxu1 %vm795_vm0, %v794_v0  ;;  %v111_v6 = vld [vmem:[#allocation2] sm:$0xff]  ;;  %v288_v7 = vld [vmem:[#allocation10 + $0x78] sm:$0xff]  ;;  %v286_v9 = vld [vmem:[#allocation10 + $0x68] sm:$0xff]  ;;  %v461_v53 = vand.u32 127, %v460_v52 }
  0x4d   :  { %538 = vmatpush3.msra.mxu0 %v116_v1  ;;  %545 = vmatpush3.msra.mxu1 %v113_v2  ;;  %v287_v8 = vld [vmem:[#allocation10 + $0x70] sm:$0xff]  ;;  %v285_v10 = vld [vmem:[#allocation10 + $0x60] sm:$0xff]  ;;  %v284_v11 = vld [vmem:[#allocation10 + $0x58] sm:$0xff] }
  0x4e   :  { %539 = vmatprep.subr.mxu0 %v794_v0  ;;  %546 = vmatprep.subr.mxu1 %v794_v0  ;;  %v283_v12 = vld [vmem:[#allocation10 + $0x50] sm:$0xff]  ;;  %v282_v13 = vld [vmem:[#allocation10 + $0x48] sm:$0xff]  ;;  %v281_v14 = vld [vmem:[#allocation10 + $0x40] sm:$0xff]  ;;  %vm462_vm2 = vcmp.lt.s32.totalorder %v461_v53, 16 }
  0x4f   :  { %540 = vmatpush3.msra.mxu0 %v115_v3  ;;  %547 = vmatpush3.msra.mxu1 %v112_v4  ;;  %v280_v15 = vld [vmem:[#allocation10 + $0x38] sm:$0xff]  ;;  %v279_v16 = vld [vmem:[#allocation10 + $0x30] sm:$0xff]  ;;  %v278_v17 = vld [vmem:[#allocation10 + $0x28] sm:$0xff] }
  0x50   :  { %542 = vmatmul.mubr.msk.f32.vlgmr.msra.gmra.mxu0 %vm117_vm1, %v114_v5  ;;  %549 = vmatmul.mubr.msk.f32.vlgmr.msra.gmra.mxu1 %vm117_vm1, %v111_v6  ;;  %v277_v18 = vld [vmem:[#allocation10 + $0x20] sm:$0xff]  ;;  %v276_v19 = vld [vmem:[#allocation10 + $0x18] sm:$0xff]  ;;  %v275_v20 = vld [vmem:[#allocation10 + $0x10] sm:$0xff] }
  0x51   :  { %551 = vmatprep.subr.mxu0 %v794_v0  ;;  %583 = vmatprep.mubr.msk.f32.mxu0 %vm795_vm0, %v794_v0  ;;  %v274_v21 = vld [vmem:[#allocation10 + $0x8] sm:$0xff]  ;;  %v273_v22 = vld [vmem:[#allocation10] sm:$0xff]  ;;  %v382_v23 = vld [vmem:[#allocation11 + $0x78] sm:$0xff] }
  0x52   :  { %552 = vmatpush3.msra.mxu0 %v288_v7  ;;  %586 = vmatprep.subr.mxu1 %v794_v0  ;;  %v381_v24 = vld [vmem:[#allocation11 + $0x70] sm:$0xff]  ;;  %v380_v25 = vld [vmem:[#allocation11 + $0x68] sm:$0xff]  ;;  %v379_v26 = vld [vmem:[#allocation11 + $0x60] sm:$0xff] }
  0x53   :  { %553 = vmatprep.subr.mxu0 %v794_v0  ;;  %618 = vmatprep.mubr.msk.f32.mxu1 %vm795_vm0, %v794_v0  ;;  %v378_v27 = vld [vmem:[#allocation11 + $0x58] sm:$0xff]  ;;  %v377_v28 = vld [vmem:[#allocation11 + $0x50] sm:$0xff]  ;;  %v376_v29 = vld [vmem:[#allocation11 + $0x48] sm:$0xff] }
  0x54   :  { %554 = vmatpush3.msra.mxu0 %v287_v8  ;;  %587 = vmatpush3.msra.mxu1 %v382_v23  ;;  %v375_v30 = vld [vmem:[#allocation11 + $0x40] sm:$0xff]  ;;  %v374_v31 = vld [vmem:[#allocation11 + $0x38] sm:$0xff]  ;;  %v373_v32 = vld [vmem:[#allocation11 + $0x30] sm:$0xff] }
  0x55   :  { %555 = vmatprep.subr.mxu0 %v794_v0  ;;  %588 = vmatprep.subr.mxu1 %v794_v0  ;;  %v372_v33 = vld [vmem:[#allocation11 + $0x28] sm:$0xff]  ;;  %v371_v34 = vld [vmem:[#allocation11 + $0x20] sm:$0xff]  ;;  %v370_v35 = vld [vmem:[#allocation11 + $0x18] sm:$0xff] }
  0x56   :  { %556 = vmatpush3.msra.mxu0 %v286_v9  ;;  %589 = vmatpush3.msra.mxu1 %v381_v24  ;;  %v494_v38 = vld [vmem:[%s937_s4] ss:$0 sm:$0xff]  ;;  %v368_v45 = vld [vmem:[#allocation11 + $0x8] sm:$0xff]  ;;  %v367_v46 = vld [vmem:[#allocation11] sm:$0xff] }
  0x57   :  { %557 = vmatprep.subr.mxu0 %v794_v0  ;;  %590 = vmatprep.subr.mxu1 %v794_v0  ;;  %v369_v44 = vld [vmem:[#allocation11 + $0x10] sm:$0xff] }
  0x58   :  { %558 = vmatpush3.msra.mxu0 %v285_v10  ;;  %591 = vmatpush3.msra.mxu1 %v380_v25  ;;  %v495_v47 = vld [vmem:[%s939_s6] ss:$0 sm:$0xff]  ;;  %s796_s6 = smov [#allocation13]  }
  0x59   :  { %559 = vmatprep.subr.mxu0 %v794_v0  ;;  %592 = vmatprep.subr.mxu1 %v794_v0  ;;  %v496_v54 = vld [vmem:[%s941_s8] ss:$0 sm:$0xff]  ;;  %s480_s19 = sshll.u32 %s796_s6, 4  ;;  %s481_s19 = int_to_ptr.vmem [resolvable:$true] %s480_s19 }
  0x5a   :  { %560 = vmatpush3.msra.mxu0 %v284_v11  ;;  %593 = vmatpush3.msra.mxu1 %v379_v26  ;;  %s756_s8 = scalar_lea.vmem %s481_s19, 128  ;;  %p761_p3 = scmp.lt.s32.totalorder %s481_s19, %s481_s19 }
  0x5b   :  { %561 = vmatprep.subr.mxu0 %v794_v0  ;;  %594 = vmatprep.subr.mxu1 %v794_v0  ;;  %p757_p2 = scmp.ne.s32.totalorder %s481_s19, %s756_s8  ;;  %p762_p4 = scmp.lt.s32.totalorder %s756_s8, %s756_s8 }
  0x5c   :  { %562 = vmatpush3.msra.mxu0 %v283_v12  ;;  %595 = vmatpush3.msra.mxu1 %v378_v27 }
  0x5d   :  { %563 = vmatprep.subr.mxu0 %v794_v0  ;;  %596 = vmatprep.subr.mxu1 %v794_v0  ;;  %p763_p5 = por %p762_p4, %p761_p3 }
  0x5e   :  { %564 = vmatpush3.msra.mxu0 %v282_v13  ;;  %597 = vmatpush3.msra.mxu1 %v377_v28 }
  0x5f   :  { %565 = vmatprep.subr.mxu0 %v794_v0  ;;  %598 = vmatprep.subr.mxu1 %v794_v0  ;;  %p764_p6 = pnand %p763_p5, %p757_p2 }
  0x60   :  { %566 = vmatpush3.msra.mxu0 %v281_v14  ;;  %599 = vmatpush3.msra.mxu1 %v376_v29 }
  0x61   :  { %567 = vmatprep.subr.mxu0 %v794_v0  ;;  %600 = vmatprep.subr.mxu1 %v794_v0 }
  0x62   :  { %568 = vmatpush3.msra.mxu0 %v280_v15  ;;  %601 = vmatpush3.msra.mxu1 %v375_v30 }
  0x63   :  { %569 = vmatprep.subr.mxu0 %v794_v0  ;;  %602 = vmatprep.subr.mxu1 %v794_v0 }
  0x64   :  { %570 = vmatpush3.msra.mxu0 %v279_v16  ;;  %603 = vmatpush3.msra.mxu1 %v374_v31 }
  0x65   :  { %571 = vmatprep.subr.mxu0 %v794_v0  ;;  %604 = vmatprep.subr.mxu1 %v794_v0 }
  0x66   :  { %572 = vmatpush3.msra.mxu0 %v278_v17  ;;  %605 = vmatpush3.msra.mxu1 %v373_v32 }
  0x67   :  { %573 = vmatprep.subr.mxu0 %v794_v0  ;;  %606 = vmatprep.subr.mxu1 %v794_v0 }
  0x68   :  { %574 = vmatpush3.msra.mxu0 %v277_v18  ;;  %607 = vmatpush3.msra.mxu1 %v372_v33 }
  0x69   :  { %575 = vmatprep.subr.mxu0 %v794_v0  ;;  %608 = vmatprep.subr.mxu1 %v794_v0 }
  0x6a   :  { %576 = vmatpush3.msra.mxu0 %v276_v19  ;;  %609 = vmatpush3.msra.mxu1 %v371_v34 }
  0x6b   :  { %577 = vmatprep.subr.mxu0 %v794_v0  ;;  %610 = vmatprep.subr.mxu1 %v794_v0 }
  0x6c   :  { %578 = vmatpush3.msra.mxu0 %v275_v20  ;;  %611 = vmatpush3.msra.mxu1 %v370_v35 }
  0x6d   :  { %579 = vmatprep.subr.mxu0 %v794_v0  ;;  %612 = vmatprep.subr.mxu1 %v794_v0 }
  0x6e   :  { %580 = vmatpush3.msra.mxu0 %v274_v21  ;;  %613 = vmatpush3.msra.mxu1 %v369_v44 }
  0x6f   :  { %581 = vmatprep.subr.mxu0 %v794_v0  ;;  %614 = vmatprep.subr.mxu1 %v794_v0 }
  0x70   :  { %582 = vmatpush3.msra.mxu0 %v273_v22  ;;  %615 = vmatpush3.msra.mxu1 %v368_v45 }
  0x71   :  { %616 = vmatprep.subr.mxu1 %v794_v0 }
  0x72   :  { %617 = vmatpush3.msra.mxu1 %v367_v46 }
 0x110   :  { %v187_v36 = vpop.f32.mrf.mxu0  ;;  %v260_v37 = vpop.f32.mrf.mxu1 }
 0x111   :  { %v261_v39 = vadd.f32 %v260_v37, %v187_v36 }
 0x112   :  { %v543_v40 = vpop.f32.mrf.mxu0  ;;  %v550_v41 = vpop.f32.mrf.mxu1 }
 0x113   :  { %v271_v42 = vadd.f32 %v494_v38, %v261_v39 }
 0x115   :  { %v272_v43 = vmax.f32 %v271_v42, 0.0 }
 0x117   :  { %584 = vmatmul.mubr.f32.vlgmr.msra.gmra.mxu0 %v272_v43 }
 0x1d7   :  { %v362_v48 = vpop.f32.mrf.mxu0 }
 0x1d8   :  { %v363_v49 = vadd.f32 %v495_v47, %v362_v48 }
 0x1d9   :  { %v585_v50 = vpop.f32.mrf.mxu0 }
 0x1da   :  { %v366_v51 = vmax.f32 %v363_v49, 0.0 }
 0x1dc   :  { %619 = vmatmul.mubr.f32.vlgmr.msra.gmra.mxu1 %v366_v51 }
 0x29c   :  { %v456_v55 = vpop.f32.mrf.mxu1 }
 0x29d   :  { %v457_v56 = vadd.f32 %v496_v54, %v456_v55 }
 0x29e   :  { %v620_v57 = vpop.f32.mrf.mxu1 }
 0x29f   :  { %v463_v58 = vsel %vm462_vm2, %v457_v56, -inf }
 0x2a0   :  { %464 = vmax.xlane.f32.xlu0 %v463_v58 }
 0x329   :  { %v465_v59 = vpop.xlane.xlu0 %464 }
 0x32a   :  { %v466_v60 = vsub.f32 %v463_v58, %v465_v59 }
 0x32c   :  { %v467_v61 = vmul.f32 1.442695, %v466_v60 }
 0x32e   :  { %632 = vpow2.f32 %v467_v61 }
 0x33b   :  { %v633_v62 = vpop.eup %632 }
 0x33c   :  { %469 = vadd.xlane.f32.xlu0 %v633_v62 }
 0x3c5   :  { %v470_v63 = vpop.xlane.xlu0 %469 }
 0x3c6   :  { %634 = vrcp.f32 %v470_v63 }
 0x3d3   :  { %v635_v0 = vpop.eup %634 }
 0x3d4   :  { %v472_v1 = vmul.f32 %v635_v0, %v633_v62 }
 0x3d6   :  { %473 = vst [vmem:[#allocation13] sm:$0xff] %v472_v1 }
 0x3d7   :  { %767 = shalt.err (!%p764_p6)
}
 0x3d8   :  { %483 = dma.vmem_to_hbm [thread:$0]  %s481_s19, 128, %s942_s9, [#allocation4]  }
 0x3d9   :  { %784 = dma.done.wait [#allocation4], 128  }
 0x3da   :  { %785 = vsyncadd [#allocation4], 4294967168 }
 0x3db   :  { %487 = vsyncpa [#allocation3], 1 }
 0x3dc   :  { %488 = vsyncpa [#allocation6], 1 }
 0x3dd   :  { %489 = vsyncpa [#allocation9], 1 }
 0x3de   :  { %490 = vsyncpa [#allocation12], 1 }
 0x3df   :  { %491 = vsyncpa [#allocation4], 1 }

</bundles_post_ra>
